<compile_context>
chip_gen: v7x
topology: tpu7x:2x2x1
jax: 0.10.0
libtpu: 0.0.40
codegen_flags: <defaults>
</compile_context>

<pallas_src>
import jax
import jax.numpy as jnp
from jax.experimental import pallas as pl
from jax.experimental.pallas import tpu as pltpu


def _round_up(x, m):
    return ((x + m - 1) // m) * m


def gate_kernel(emb_ref, w1_ref, b1_ref, w2_ref, b2_ref, easy_ref, hard_ref):
    emb = emb_ref[...]                                              # (TB, D) f32

    # Hidden layer: Linear(D -> H) + ReLU  (MXU, f32 accumulate).
    h = jnp.dot(emb, w1_ref[...], preferred_element_type=jnp.float32)
    h = jnp.maximum(h + b1_ref[...], 0.0)                           # (TB, H)

    # Output layer: Linear(H -> 1). N=1 MXU matmul replaced by a lane-wise
    # multiply (VPU) + cross-lane reduce (XLU); b2 is an SMEM scalar.
    logit = jnp.sum(h * w2_ref[...], axis=-1, keepdims=True) + b2_ref[0]  # (TB, 1)

    # sigmoid = 1 / (1 + exp(-x)); exp and approx reciprocal both issue on the
    # EUP slot, off the VALU.
    gate = pl.reciprocal(1.0 + jnp.exp(-logit), approx=True)        # (TB, 1)

    # Gated outputs. hard = emb - easy saves a full (TB, D) multiply and keeps
    # the easy + hard == emb invariant exact.
    easy = emb * gate
    easy_ref[...] = easy
    hard_ref[...] = emb - easy


def gate_forward(feature_emb, w1, b1, w2, b2, *, tb=1024):
    B, D = feature_emb.shape
    H = w1.shape[1]

    # 8-aligned batch tile, clamped to (a) the sublane-padded batch and (b) a
    # VMEM budget (3 (tb, D) arrays, double-buffered, must fit comfortably
    # even under v7x's smaller VMEM / default scoped limits).
    vmem_budget = 16 << 20
    tb_cap = max(8, (vmem_budget // (3 * 2 * D * 4)) // 8 * 8)
    tb = max(8, min(_round_up(tb, 8), _round_up(B, 8), tb_cap))
    Bp = _round_up(B, tb)
    x = feature_emb if Bp == B else jnp.pad(feature_emb, ((0, Bp - B), (0, 0)))

    w2_row = w2.reshape(1, H).astype(jnp.float32)   # (1, H) for lane-wise use
    b2_s = b2.reshape(1).astype(jnp.float32)        # scalar in SMEM

    grid = (Bp // tb,)

    # Raise the scoped VMEM limit only if the (double-buffered) tile footprint
    # actually needs it — matters on v5e (16 MiB scoped default) at large tb.
    bytes_per_step = (3 * 2 * tb * D + 2 * D * H + 2 * H) * 4
    compiler_kwargs = dict(dimension_semantics=("parallel",))
    if bytes_per_step > (12 << 20):
        compiler_kwargs["vmem_limit_bytes"] = min(
            int(bytes_per_step * 1.5), 60 << 20)

    easy, hard = pl.pallas_call(
        gate_kernel,
        out_shape=(
            jax.ShapeDtypeStruct((Bp, D), jnp.float32),
            jax.ShapeDtypeStruct((Bp, D), jnp.float32),
        ),
        grid_spec=pltpu.PrefetchScalarGridSpec(
            num_scalar_prefetch=0,
            grid=grid,
            in_specs=[
                pl.BlockSpec((tb, D), lambda i: (i, 0)),   # feature_emb tile
                pl.BlockSpec((D, H), lambda i: (0, 0)),    # W1 (resident)
                pl.BlockSpec((1, H), lambda i: (0, 0)),    # b1
                pl.BlockSpec((1, H), lambda i: (0, 0)),    # W2 as a row
                pl.BlockSpec(memory_space=pltpu.MemorySpace.SMEM),  # b2 scalar
            ],
            out_specs=[
                pl.BlockSpec((tb, D), lambda i: (i, 0)),
                pl.BlockSpec((tb, D), lambda i: (i, 0)),
            ],
        ),
        compiler_params=pltpu.CompilerParams(**compiler_kwargs),
    )(x, w1, b1, w2_row, b2_s)

    if Bp != B:
        easy = easy[:B]
        hard = hard[:B]
    return easy, hard


def reference(feature_emb, w1, b1, w2, b2):
    h = jnp.maximum(feature_emb @ w1 + b1, 0.0)
    gate = jax.nn.sigmoid(h @ w2 + b2)
    return feature_emb * gate, feature_emb * (1.0 - gate)


if __name__ == "__main__":
    key = jax.random.PRNGKey(0)

    # Small, module-consistent shapes.
    B = 40           # batch (deliberately NOT a power of 2 / multiple of 16)
    num_fields = 8   # number of categorical features
    emb_dim = 16     # embedding_dim
    vocab = 50       # per-field vocab size
    D = num_fields * emb_dim          # sum_emb_out_dim() = 128
    H = D // 4                        # hidden_units = [input_dim // 4] = 32

    k_emb, k_x, k_w1, k_b1, k_w2, k_b2 = jax.random.split(key, 6)

    # FeatureEmbedding tables (one per field, stacked) — deterministic init.
    emb_tables = jax.random.normal(k_emb, (num_fields, vocab, emb_dim),
                                   dtype=jnp.float32) * 0.1
    # Integer feature ids X: (B, num_fields)
    X = jax.random.randint(k_x, (B, num_fields), 0, vocab)

    # Glue: embedding lookup + flatten -> (B, D). (Data-dependent gather has
    # no clean rectangular BlockSpec form; it stays outside the kernel.)
    feature_emb = emb_tables[jnp.arange(num_fields)[None, :], X]  # (B, F, E)
    feature_emb = feature_emb.reshape(B, D).astype(jnp.float32)

    # MLP_Block parameters (deterministic).
    w1 = jax.random.normal(k_w1, (D, H), dtype=jnp.float32) * 0.05
    b1 = jax.random.normal(k_b1, (1, H), dtype=jnp.float32) * 0.01
    w2 = jax.random.normal(k_w2, (H, 1), dtype=jnp.float32) * 0.05
    b2 = jax.random.normal(k_b2, (1, 1), dtype=jnp.float32) * 0.01

    # TODO(synk): batch_norm / dropout branches of MLP_Block are omitted
    # (inference-mode semantics with batch_norm=False, net_dropout=0).

    easy_ref_out, hard_ref_out = reference(feature_emb, w1, b1, w2, b2)

    # 1) Default (bandwidth-friendly) tile — clamps to a single 40-row tile.
    easy_out, hard_out = gate_forward(feature_emb, w1, b1, w2, b2)
    easy_out = jax.block_until_ready(easy_out)
    hard_out = jax.block_until_ready(hard_out)

    # 2) Small tile to exercise the multi-step grid + padded tail path.
    easy_t, hard_t = gate_forward(feature_emb, w1, b1, w2, b2, tb=16)
    easy_t = jax.block_until_ready(easy_t)
    hard_t = jax.block_until_ready(hard_t)

    # Tolerances account for the EUP approximate reciprocal in the sigmoid.
    for e, h_ in ((easy_out, hard_out), (easy_t, hard_t)):
        assert jnp.allclose(e, easy_ref_out, atol=1e-3, rtol=1e-3)
        assert jnp.allclose(h_, hard_ref_out, atol=1e-3, rtol=1e-3)
        # Invariant from the module: easy_out + hard_out == feature_emb
        # (exact here since hard = emb - easy inside the kernel).
        assert jnp.allclose(e + h_, feature_emb, atol=1e-6, rtol=1e-6)

    print("KERNEL_OK")
</pallas_src>

<mosaic_0001>
module attributes {stable_mosaic.version = 11 : i64} {
  func.func @gate_kernel(%arg0: i32, %arg1: memref<40x128xf32, #tpu.memory_space<vmem>>, %arg2: memref<128x32xf32, #tpu.memory_space<vmem>>, %arg3: memref<1x32xf32, #tpu.memory_space<vmem>>, %arg4: memref<1x32xf32, #tpu.memory_space<vmem>>, %arg5: memref<1xf32, #tpu.memory_space<smem>>, %arg6: memref<40x128xf32, #tpu.memory_space<vmem>>, %arg7: memref<40x128xf32, #tpu.memory_space<vmem>>) attributes {dimension_semantics = [#tpu.dimension_semantics<parallel>], iteration_bounds = array<i64: 1>, scalar_prefetch = 0 : i64, scratch_operands = 0 : i64, tpu.core_type = #tpu.core_type<tc>, window_params = [{transform_indices = @transform_0, window_bounds = array<i64: 40, 128>}, {pipeline_mode = #tpu.pipeline_mode<synchronous>, transform_indices = @transform_1, window_bounds = array<i64: 128, 32>}, {pipeline_mode = #tpu.pipeline_mode<synchronous>, transform_indices = @transform_2, window_bounds = array<i64: 1, 32>}, {pipeline_mode = #tpu.pipeline_mode<synchronous>, transform_indices = @transform_3, window_bounds = array<i64: 1, 32>}, {transform_indices = @transform_4, window_bounds = array<i64: 1>}, {transform_indices = @transform_5, window_bounds = array<i64: 40, 128>}, {transform_indices = @transform_6, window_bounds = array<i64: 40, 128>}]} {
    %c0 = arith.constant 0 : index
    %c0_0 = arith.constant 0 : index
    %0 = vector.load %arg1[%c0, %c0_0] : memref<40x128xf32, #tpu.memory_space<vmem>>, vector<40x128xf32>
    %c0_1 = arith.constant 0 : index
    %c0_2 = arith.constant 0 : index
    %1 = vector.load %arg2[%c0_1, %c0_2] : memref<128x32xf32, #tpu.memory_space<vmem>>, vector<128x32xf32>
    %cst = arith.constant dense<0.000000e+00> : vector<40x32xf32>
    %2 = tpu.matmul %0, %1, %cst {dimension_numbers = #tpu.dot_dimension_numbers<[1], [0], [0], [1], [0, 0, 1, 1], [], []>} : vector<40x128xf32>, vector<128x32xf32>, vector<40x32xf32> -> vector<40x32xf32>
    %c0_3 = arith.constant 0 : index
    %c0_4 = arith.constant 0 : index
    %3 = vector.load %arg3[%c0_3, %c0_4] : memref<1x32xf32, #tpu.memory_space<vmem>>, vector<1x32xf32>
    %4 = vector.broadcast %3 : vector<1x32xf32> to vector<40x32xf32>
    %5 = arith.addf %2, %4 : vector<40x32xf32>
    %cst_5 = arith.constant 0.000000e+00 : f32
    %6 = vector.broadcast %cst_5 : f32 to vector<40x32xf32>
    %7 = arith.maximumf %5, %6 : vector<40x32xf32>
    %c0_6 = arith.constant 0 : index
    %c0_7 = arith.constant 0 : index
    %8 = vector.load %arg4[%c0_6, %c0_7] : memref<1x32xf32, #tpu.memory_space<vmem>>, vector<1x32xf32>
    %9 = vector.broadcast %8 : vector<1x32xf32> to vector<40x32xf32>
    %10 = arith.mulf %7, %9 : vector<40x32xf32>
    %cst_8 = arith.constant dense<0.000000e+00> : vector<40xf32>
    %11 = vector.multi_reduction <add>, %10, %cst_8 [1] : vector<40x32xf32> to vector<40xf32>
    %12 = vector.shape_cast %11 : vector<40xf32> to vector<40x1xf32>
    %c0_9 = arith.constant 0 : index
    %13 = memref.load %arg5[%c0_9] : memref<1xf32, #tpu.memory_space<smem>>
    %14 = vector.broadcast %13 : f32 to vector<40x1xf32>
    %15 = arith.addf %12, %14 : vector<40x1xf32>
    %cst_10 = arith.constant 0.000000e+00 : f32
    %16 = vector.broadcast %cst_10 : f32 to vector<40x1xf32>
    %17 = arith.subf %16, %15 : vector<40x1xf32>
    %18 = math.exp %17 : vector<40x1xf32>
    %cst_11 = arith.constant 1.000000e+00 : f32
    %19 = vector.broadcast %cst_11 : f32 to vector<40x1xf32>
    %20 = arith.addf %19, %18 : vector<40x1xf32>
    %21 = tpu.reciprocal %20 {approx = true} : vector<40x1xf32> -> vector<40x1xf32>
    %22 = vector.broadcast %21 : vector<40x1xf32> to vector<40x128xf32>
    %23 = arith.mulf %0, %22 : vector<40x128xf32>
    %c0_12 = arith.constant 0 : index
    %c0_13 = arith.constant 0 : index
    %24 = vector.load %arg6[%c0_12, %c0_13] : memref<40x128xf32, #tpu.memory_space<vmem>>, vector<40x128xf32>
    tpu.vector_store %arg6[%c0_12, %c0_13], %23 {strides = array<i32>} : memref<40x128xf32, #tpu.memory_space<vmem>>, vector<40x128xf32>,
    %25 = arith.subf %0, %23 : vector<40x128xf32>
    %c0_14 = arith.constant 0 : index
    %c0_15 = arith.constant 0 : index
    %26 = vector.load %arg7[%c0_14, %c0_15] : memref<40x128xf32, #tpu.memory_space<vmem>>, vector<40x128xf32>
    tpu.vector_store %arg7[%c0_14, %c0_15], %25 {strides = array<i32>} : memref<40x128xf32, #tpu.memory_space<vmem>>, vector<40x128xf32>,
    return
  }
  func.func @transform_0(%arg0: i32) -> (i32, i32) {
    %c0_i32 = arith.constant 0 : i32
    %c0_i32_0 = arith.constant 0 : i32
    return %arg0, %c0_i32 : i32, i32
  }
  func.func @transform_1(%arg0: i32) -> (i32, i32) {
    %c0_i32 = arith.constant 0 : i32
    %c0_i32_0 = arith.constant 0 : i32
    %c0_i32_1 = arith.constant 0 : i32
    return %c0_i32, %c0_i32_0 : i32, i32
  }
  func.func @transform_2(%arg0: i32) -> (i32, i32) {
    %c0_i32 = arith.constant 0 : i32
    %c0_i32_0 = arith.constant 0 : i32
    %c0_i32_1 = arith.constant 0 : i32
    return %c0_i32, %c0_i32_0 : i32, i32
  }
  func.func @transform_3(%arg0: i32) -> (i32, i32) {
    %c0_i32 = arith.constant 0 : i32
    %c0_i32_0 = arith.constant 0 : i32
    %c0_i32_1 = arith.constant 0 : i32
    return %c0_i32, %c0_i32_0 : i32, i32
  }
  func.func @transform_4(%arg0: i32) -> i32 {
    %c0_i32 = arith.constant 0 : i32
    %c0_i32_0 = arith.constant 0 : i32
    return %c0_i32 : i32
  }
  func.func @transform_5(%arg0: i32) -> (i32, i32) {
    %c0_i32 = arith.constant 0 : i32
    %c0_i32_0 = arith.constant 0 : i32
    return %arg0, %c0_i32 : i32, i32
  }
  func.func @transform_6(%arg0: i32) -> (i32, i32) {
    %c0_i32 = arith.constant 0 : i32
    %c0_i32_0 = arith.constant 0 : i32
    return %arg0, %c0_i32 : i32, i32
  }
}

</mosaic_0001>

<bundles_post_ra>
// kernel: tpu_custom_call.1
= control target key start
LH: loop header
LB: loop body
LE: loop exit
PB: predicated region body
PF: predicated region fallthrough
CT: control target
= control target key end

     0   :  { %13 = vsyncpa [#allocation4], 0  ;;  %v445_v3 = vmov 0.0|0.0   ;;  %vm446_vm0 = vmmov 0   ;;  %v447_v6 = vmov 0.0   ;;  %s630_s0 = inlined_call_operand.vmem [shape: f32[40,128], index: 0, kind: input, shape index: {}]   ;;  %s631_s1 = inlined_call_operand.vmem [shape: f32[128,32], index: 1, kind: input, shape index: {}]   ;;  %s632_s2 = inlined_call_operand.vmem [shape: f32[1,32], index: 2, kind: input, shape index: {}]   ;;  %s633_s3 = inlined_call_operand.vmem [shape: f32[1,32], index: 3, kind: input, shape index: {}]   ;;  %s634_s4 = inlined_call_operand.<no memory space> [shape: f32[1], index: 4, kind: input, shape index: {}]   ;;  %s635_s5 = inlined_call_operand.hbm [shape: f32[40,128], index: 5, kind: output, shape index: {0}]   ;;  %s636_s6 = inlined_call_operand.hbm [shape: f32[40,128], index: 6, kind: output, shape index: {1}]  }
   0x1   :  { %v30_v0 = vld [vmem:[%s631_s1] sm:$0xff]  ;;  %v31_v1 = vld [vmem:[%s631_s1 + $0x8] sm:$0xff]  ;;  %v32_v2 = vld [vmem:[%s631_s1 + $0x10] sm:$0xff]  ;;  %330 = vmatprep.subr.bf16.mxu0 %v445_v3  ;;  %354 = vmatprep.subr.bf16.mxu1 %v445_v3 }
   0x2   :  { %v331_v4 = vpack.c.bf16 %v31_v1, %v30_v0  ;;  %v33_v5 = vld [vmem:[%s631_s1 + $0x18] sm:$0xff]  ;;  %315 = vmatprep.mubr.msk.f32.mxu0 %vm446_vm0, %v447_v6  ;;  %324 = vmatprep.mubr.msk.f32.mxu1 %vm446_vm0, %v447_v6  ;;  %v34_v8 = vld [vmem:[%s631_s1 + $0x20] sm:$0xff]  ;;  %v35_v9 = vld [vmem:[%s631_s1 + $0x28] sm:$0xff] }
   0x3   :  { %v334_v7 = vpack.c.bf16 %v33_v5, %v32_v2  ;;  %v337_v10 = vpack.c.bf16 %v35_v9, %v34_v8 }
   0x4   :  { %332 = vmatpush3.bf16.msra.mxu0 %v331_v4  ;;  %362 = vmatpush3.bf16.msra.mxu1 %v331_v4 }
   0x5   :  { %333 = vmatprep.subr.bf16.mxu0 %v445_v3  ;;  %355 = vmatprep.subr.bf16.mxu1 %v445_v3 }
   0x8   :  { %335 = vmatpush3.bf16.msra.mxu0 %v334_v7  ;;  %363 = vmatpush3.bf16.msra.mxu1 %v334_v7 }
   0x9   :  { %14 = vsyncpa [#allocation6], 0  ;;  %336 = vmatprep.subr.bf16.mxu0 %v445_v3  ;;  %v36_v11 = vld [vmem:[%s631_s1 + $0x30] sm:$0xff]  ;;  %v37_v12 = vld [vmem:[%s631_s1 + $0x38] sm:$0xff]  ;;  %356 = vmatprep.subr.bf16.mxu1 %v445_v3  ;;  %vm160_vm1 = vcmask 261120   ;;  %v177_v63 = vstv %s634_s4  ;;  %s449_s18 = smov [#allocation5]  }
   0xa   :  { %v340_v13 = vpack.c.bf16 %v37_v12, %v36_v11  ;;  %v38_v14 = vld [vmem:[%s631_s1 + $0x40] sm:$0xff]  ;;  %v39_v15 = vld [vmem:[%s631_s1 + $0x48] sm:$0xff]  ;;  %v40_v17 = vld [vmem:[%s631_s1 + $0x50] sm:$0xff]  ;;  %s245_s19 = sshll.u32 %s449_s18, 4  ;;  %s599_s19 = int_to_ptr.vmem [resolvable:$true] %s245_s19 }
   0xb   :  { %v343_v16 = vpack.c.bf16 %v39_v15, %v38_v14  ;;  %v41_v18 = vld [vmem:[%s631_s1 + $0x58] sm:$0xff]  ;;  %v42_v20 = vld [vmem:[%s631_s1 + $0x60] sm:$0xff]  ;;  %v43_v21 = vld [vmem:[%s631_s1 + $0x68] sm:$0xff] }
   0xc   :  { %338 = vmatpush3.bf16.msra.mxu0 %v337_v10  ;;  %364 = vmatpush3.bf16.msra.mxu1 %v337_v10  ;;  %v346_v19 = vpack.c.bf16 %v41_v18, %v40_v17  ;;  %v349_v22 = vpack.c.bf16 %v43_v21, %v42_v20  ;;  %v44_v23 = vld [vmem:[%s631_s1 + $0x70] sm:$0xff]  ;;  %v45_v24 = vld [vmem:[%s631_s1 + $0x78] sm:$0xff]  ;;  %v542_v26 = vld [vmem:[%s630_s0] sm:$0xff] }
   0xd   :  { %339 = vmatprep.subr.bf16.mxu0 %v445_v3  ;;  %357 = vmatprep.subr.bf16.mxu1 %v445_v3  ;;  %v352_v25 = vpack.c.bf16 %v45_v24, %v44_v23  ;;  %v547_v27 = vld [vmem:[%s630_s0 + $0x18] sm:$0xff]  ;;  %v556_v28 = vld [vmem:[%s630_s0 + $0x8] sm:$0xff]  ;;  %v563_v29 = vld [vmem:[%s630_s0 + $0x20] sm:$0xff] }
   0xe   :  { %v572_v30 = vld [vmem:[%s630_s0 + $0x10] sm:$0xff]  ;;  %v260_v31 = vld [vmem:[%s632_s2] ss:$0 sm:$0xff] }
   0xf   :  { %v261_v37 = vld [vmem:[%s633_s3] ss:$0 sm:$0xff]  ;;  %s448_s3 = smov [#allocation3]  }
  0x10   :  { %341 = vmatpush3.bf16.msra.mxu0 %v340_v13  ;;  %365 = vmatpush3.bf16.msra.mxu1 %v340_v13  ;;  %s233_s4 = sshll.u32 %s448_s3, 4  ;;  %s234_s4 = int_to_ptr.vmem [resolvable:$true] %s233_s4 }
  0x11   :  { %342 = vmatprep.subr.bf16.mxu0 %v445_v3  ;;  %358 = vmatprep.subr.bf16.mxu1 %v445_v3  ;;  %s397_s20 = scalar_lea.vmem %s234_s4, 640  ;;  %p402_p1 = scmp.lt.s32.totalorder %s234_s4, %s234_s4 }
  0x12   :  { %p398_p0 = scmp.ne.s32.totalorder %s234_s4, %s397_s20  ;;  %p403_p2 = scmp.lt.s32.totalorder %s397_s20, %s397_s20 }
  0x14   :  { %344 = vmatpush3.bf16.msra.mxu0 %v343_v16  ;;  %366 = vmatpush3.bf16.msra.mxu1 %v343_v16  ;;  %p404_p3 = por %p403_p2, %p402_p1 }
  0x15   :  { %345 = vmatprep.subr.bf16.mxu0 %v445_v3  ;;  %359 = vmatprep.subr.bf16.mxu1 %v445_v3 }
  0x16   :  { %p405_p4 = pnand %p404_p3, %p398_p0 }
  0x18   :  { %347 = vmatpush3.bf16.msra.mxu0 %v346_v19  ;;  %367 = vmatpush3.bf16.msra.mxu1 %v346_v19 }
  0x19   :  { %348 = vmatprep.subr.bf16.mxu0 %v445_v3  ;;  %360 = vmatprep.subr.bf16.mxu1 %v445_v3 }
  0x1c   :  { %350 = vmatpush3.bf16.msra.mxu0 %v349_v22  ;;  %368 = vmatpush3.bf16.msra.mxu1 %v349_v22 }
  0x1d   :  { %351 = vmatprep.subr.bf16.mxu0 %v445_v3  ;;  %361 = vmatprep.subr.bf16.mxu1 %v445_v3 }
  0x20   :  { %353 = vmatpush3.bf16.msra.mxu0 %v352_v25  ;;  %369 = vmatpush3.bf16.msra.mxu1 %v352_v25 }
  0x23   :  { %316 = vmatmul.mubr.f32.vlgmr.msra.gmra.mrb[0].mxu0 %v542_v26  ;;  %325 = vmatmul.mubr.f32.vlgmr.msra.gmra.mrb[0].mxu1 %v547_v27 }
  0x24   :  { %318 = vmatprep.mubr.msk.f32.mxu0 %vm446_vm0, %v447_v6  ;;  %327 = vmatprep.mubr.msk.f32.mxu1 %vm446_vm0, %v447_v6 }
  0x27   :  { %319 = vmatmul.mubr.f32.gmra.mrb[2].mxu0 %v556_v28  ;;  %328 = vmatmul.mubr.f32.gmra.mrb[2].mxu1 %v563_v29 }
  0x28   :  { %321 = vmatprep.mubr.msk.f32.mxu0 %vm446_vm0, %v447_v6 }
  0x2b   :  { %322 = vmatmul.mubr.f32.gmra.mrb[4].mxu0 %v572_v30 }
  0xf6   :  { %v119_v32 = vpop.f32.mrb[0].mxu0  ;;  %v134_v33 = vpop.f32.mrb[0].mxu1 }
  0xf7   :  { %v120_v34 = vadd.f32 %v260_v31, %v119_v32  ;;  %v317_v35 = vpop.f32.mrb[1].mxu0  ;;  %v326_v36 = vpop.f32.mrb[1].mxu1  ;;  %v135_v47 = vadd.f32 %v260_v31, %v134_v33 }
  0xf9   :  { %v143_v38 = vmax.f32 %v120_v34, 0.0  ;;  %v146_v55 = vmax.f32 %v135_v47, 0.0 }
  0xfa   :  { %v124_v39 = vpop.f32.mrb[2].mxu0  ;;  %v139_v40 = vpop.f32.mrb[2].mxu1 }
  0xfb   :  { %v125_v41 = vadd.f32 %v260_v31, %v124_v39  ;;  %v320_v42 = vpop.f32.mrb[3].mxu0  ;;  %v155_v43 = vmul.f32 %v261_v37, %v143_v38  ;;  %v140_v44 = vadd.f32 %v260_v31, %v139_v40  ;;  %v329_v45 = vpop.f32.mrb[3].mxu1  ;;  %v158_v61 = vmul.f32 %v261_v37, %v146_v55 }
  0xfd   :  { %v144_v46 = vmax.f32 %v125_v41, 0.0  ;;  %v161_v48 = vsel %vm160_vm1, %v155_v43, 0.0  ;;  %v147_v49 = vmax.f32 %v140_v44, 0.0  ;;  %v170_v62 = vsel %vm160_vm1, %v158_v61, 0.0 }
  0xfe   :  { %162 = vadd.xlane.f32.xlu0 %v161_v48  ;;  %v129_v50 = vpop.f32.mrb[4].mxu0 }
  0xff   :  { %v130_v51 = vadd.f32 %v260_v31, %v129_v50  ;;  %v323_v52 = vpop.f32.mrb[5].mxu0  ;;  %v156_v53 = vmul.f32 %v261_v37, %v144_v46  ;;  %v159_v54 = vmul.f32 %v261_v37, %v147_v49 }
 0x101   :  { %v145_v56 = vmax.f32 %v130_v51, 0.0  ;;  %v164_v57 = vsel %vm160_vm1, %v156_v53, 0.0  ;;  %v173_v59 = vsel %vm160_vm1, %v159_v54, 0.0 }
 0x102   :  { %165 = vadd.xlane.f32.xlu0 %v164_v57 }
 0x103   :  { %v157_v58 = vmul.f32 %v261_v37, %v145_v56 }
 0x105   :  { %v167_v60 = vsel %vm160_vm1, %v157_v58, 0.0 }
 0x106   :  { %168 = vadd.xlane.f32.xlu1 %v167_v60  ;;  %174 = vadd.xlane.f32.xlu0 %v173_v59 }
 0x10a   :  { %171 = vadd.xlane.f32.xlu1 %v170_v62 }
 0x18b   :  { %v163_v0 = vpop.xlane.xlu0 %162 }
 0x18c   :  { %v178_v1 = vadd.f32 %v177_v63, %v163_v0 }
 0x18e   :  { %v183_v2 = vsub.f32 0.0, %v178_v1 }
 0x18f   :  { %v166_v3 = vpop.xlane.xlu0 %165 }
 0x190   :  { %v188_v4 = vmul.f32 1.442695, %v183_v2  ;;  %v179_v5 = vadd.f32 %v177_v63, %v166_v3 }
 0x192   :  { %377 = vpow2.f32 %v188_v4  ;;  %v184_v6 = vsub.f32 0.0, %v179_v5 }
 0x193   :  { %v169_v7 = vpop.xlane.xlu1 %168  ;;  %v175_v8 = vpop.xlane.xlu0 %174 }
 0x194   :  { %v190_v9 = vmul.f32 1.442695, %v184_v6  ;;  %v180_v10 = vadd.f32 %v177_v63, %v169_v7  ;;  %v182_v11 = vadd.f32 %v177_v63, %v175_v8 }
 0x196   :  { %379 = vpow2.f32 %v190_v9  ;;  %v185_v12 = vsub.f32 0.0, %v180_v10  ;;  %v187_v13 = vsub.f32 0.0, %v182_v11 }
 0x197   :  { %v172_v14 = vpop.xlane.xlu1 %171 }
 0x198   :  { %v192_v15 = vmul.f32 1.442695, %v185_v12  ;;  %v196_v16 = vmul.f32 1.442695, %v187_v13  ;;  %v181_v17 = vadd.f32 %v177_v63, %v172_v14 }
 0x19a   :  { %381 = vpow2.f32 %v192_v15  ;;  %v186_v18 = vsub.f32 0.0, %v181_v17 }
 0x19b   :  { %383 = vpow2.f32 %v196_v16 }
 0x19c   :  { %v378_v19 = vpop.eup %377  ;;  %v194_v20 = vmul.f32 1.442695, %v186_v18 }
 0x19d   :  { %v198_v21 = vadd.f32 1.0, %v378_v19 }
 0x19e   :  { %385 = vpow2.f32 %v194_v20 }
 0x19f   :  { %387 = vrcp.f32 %v198_v21 }
 0x1a0   :  { %v380_v22 = vpop.eup %379 }
 0x1a1   :  { %v199_v23 = vadd.f32 1.0, %v380_v22 }
 0x1a3   :  { %389 = vrcp.f32 %v199_v23 }
 0x1a4   :  { %v382_v24 = vpop.eup %381 }
 0x1a5   :  { %v384_v25 = vpop.eup %383  ;;  %v200_v31 = vadd.f32 1.0, %v382_v24 }
 0x1a6   :  { %v202_v32 = vadd.f32 1.0, %v384_v25 }
 0x1a7   :  { %391 = vrcp.f32 %v200_v31 }
 0x1a8   :  { %v386_v33 = vpop.eup %385  ;;  %393 = vrcp.f32 %v202_v32 }
 0x1a9   :  { %v388_v34 = vpop.eup %387  ;;  %v201_v35 = vadd.f32 1.0, %v386_v33 }
 0x1aa   :  { %v208_v36 = vmul.f32 %v388_v34, %v542_v26 }
 0x1ab   :  { %395 = vrcp.f32 %v201_v35 }
 0x1ac   :  { %v218_v37 = vsub.f32 %v542_v26, %v208_v36  ;;  %213 = vst [vmem:[#allocation3] sm:$0xff] %v208_v36 }
 0x1ad   :  { %v390_v38 = vpop.eup %389 }
 0x1ae   :  { %223 = vst [vmem:[#allocation5] sm:$0xff] %v218_v37  ;;  %v209_v39 = vmul.f32 %v390_v38, %v556_v28 }
 0x1b0   :  { %v219_v40 = vsub.f32 %v556_v28, %v209_v39  ;;  %214 = vst [vmem:[#allocation3 + $0x8] sm:$0xff] %v209_v39 }
 0x1b1   :  { %v392_v41 = vpop.eup %391 }
 0x1b2   :  { %v394_v42 = vpop.eup %393  ;;  %224 = vst [vmem:[#allocation5 + $0x8] sm:$0xff] %v219_v40  ;;  %v210_v43 = vmul.f32 %v392_v41, %v572_v30 }
 0x1b3   :  { %v212_v44 = vmul.f32 %v394_v42, %v563_v29 }
 0x1b4   :  { %v220_v45 = vsub.f32 %v572_v30, %v210_v43  ;;  %215 = vst [vmem:[#allocation3 + $0x10] sm:$0xff] %v210_v43 }
 0x1b5   :  { %v396_v26 = vpop.eup %395  ;;  %v222_v46 = vsub.f32 %v563_v29, %v212_v44  ;;  %217 = vst [vmem:[#allocation3 + $0x20] sm:$0xff] %v212_v44 }
 0x1b6   :  { %225 = vst [vmem:[#allocation5 + $0x10] sm:$0xff] %v220_v45  ;;  %v211_v28 = vmul.f32 %v396_v26, %v547_v27 }
 0x1b7   :  { %227 = vst [vmem:[#allocation5 + $0x20] sm:$0xff] %v222_v46 }
 0x1b8   :  { %v221_v47 = vsub.f32 %v547_v27, %v211_v28  ;;  %216 = vst [vmem:[#allocation3 + $0x18] sm:$0xff] %v211_v28 }
 0x1b9   :  { %408 = shalt.err (!%p405_p4)
}
 0x1ba   :  { %s409_s23 = scalar_lea.hbm %s635_s5, 640 }
 0x1bb   :  { %p410_p5 = scmp.ne.s32.totalorder %s635_s5, %s409_s23  ;;  %p413_p6 = scmp.lt.u32.totalorder %s409_s23, %s635_s5 }
 0x1bd   :  { %p415_p7 = pnand %p413_p6, %p410_p5 }
 0x1bf   :  { %418 = shalt.err (!%p415_p7)
}
 0x1c0   :  { %s450_s28 = smov 128   ;;  %s451_s29 = smov 8   ;;  %226 = vst [vmem:[#allocation5 + $0x18] sm:$0xff] %v221_v47 }
 0x1c1   :  { %239 = dma.vmem_to_hbm [thread:$0]  %s234_s4, 640, %s635_s5, [#allocation4], %s450_s28, %s450_s28, %s451_s29  }
 0x1c2   :  { %s419_s8 = scalar_lea.vmem %s599_s19, 640  ;;  %p424_p9 = scmp.lt.s32.totalorder %s599_s19, %s599_s19 }
 0x1c3   :  { %p420_p8 = scmp.ne.s32.totalorder %s599_s19, %s419_s8  ;;  %p425_p10 = scmp.lt.s32.totalorder %s419_s8, %s419_s8 }
 0x1c5   :  { %p426_p11 = por %p425_p10, %p424_p9 }
 0x1c7   :  { %p427_p12 = pnand %p426_p11, %p420_p8 }
 0x1c9   :  { %430 = shalt.err (!%p427_p12)
}
 0x1ca   :  { %s431_s10 = scalar_lea.hbm %s636_s6, 640 }
 0x1cb   :  { %p432_p13 = scmp.ne.s32.totalorder %s636_s6, %s431_s10  ;;  %p435_p0 = scmp.lt.u32.totalorder %s431_s10, %s636_s6 }
 0x1cd   :  { %p437_p1 = pnand %p435_p0, %p432_p13 }
 0x1cf   :  { %440 = shalt.err (!%p437_p1)
}
 0x1d0   :  { %251 = dma.vmem_to_hbm [thread:$0]  %s599_s19, 640, %s636_s6, [#allocation6], %s450_s28, %s450_s28, %s451_s29  }
 0x1d1   :  { %441 = dma.done.wait [#allocation4], 640  }
 0x1d2   :  { %442 = vsyncadd [#allocation4], 4294966656 }
 0x1d3   :  { %443 = dma.done.wait [#allocation6], 640  }
 0x1d4   :  { %444 = vsyncadd [#allocation6], 4294966656 }
 0x1d5   :  { %258 = vsyncpa [#allocation4], 1 }
 0x1d6   :  { %259 = vsyncpa [#allocation6], 1 }

</bundles_post_ra>
